<compile_context>
chip_gen: v7x
topology: tpu7x:2x2x1
jax: 0.10.0
libtpu: 0.0.40
codegen_flags: <defaults>
</compile_context>

<pallas_src>
import jax
import jax.numpy as jnp
from jax import lax
from jax.experimental import pallas as pl
from jax.experimental.pallas import tpu as pltpu

EPS = 1e-5


def basic_block_kernel(x_ref, w1_ref, w2_ref, pool_ref, up_ref, dn_ref,
                       g1_ref, b1_ref, g2_ref, b2_ref, out_ref):
    f32 = jnp.float32
    x = x_ref[...]            # (rows, W*C), lane-dense
    pool = pool_ref[...]      # (W*C, W*C): per-channel mean pooling (1/NHW baked in)
    s_up = up_ref[...]        # (rows, rows): shift to previous image row (0 at h==0)
    s_dn = dn_ref[...]        # (rows, rows): shift to next image row (0 at h==H-1)

    def conv3x3(act, w_ref):
        # out[r] = act[r-1] @ B0 + act[r] @ B1 + act[r+1] @ B2, with the
        # W-direction taps (and W padding) already folded into the banded
        # B matrices and the H padding / batch boundaries baked into s_up/s_dn.
        y0 = jnp.dot(act, w_ref[0], preferred_element_type=f32)
        y1 = jnp.dot(act, w_ref[1], preferred_element_type=f32)
        y2 = jnp.dot(act, w_ref[2], preferred_element_type=f32)
        return (jnp.dot(s_up, y0, preferred_element_type=f32) + y1
                + jnp.dot(s_dn, y2, preferred_element_type=f32))

    def bn(acc, g_ref, b_ref):
        # One pass: per-channel E[x], E[x^2] via row-sum + lane pooling matmul,
        # then a single fused scale/shift (gamma/beta arrive pre-tiled to W*C).
        s = jnp.sum(acc, axis=0, keepdims=True)            # (1, W*C)
        q = jnp.sum(acc * acc, axis=0, keepdims=True)      # (1, W*C)
        mean = jnp.dot(s, pool, preferred_element_type=f32)   # per-channel, lane-bcast
        msq = jnp.dot(q, pool, preferred_element_type=f32)
        var = msq - mean * mean                            # biased batch variance
        scale = g_ref[...] * lax.rsqrt(var + EPS)          # rsqrt rides the EUP slot
        shift = b_ref[...] - mean * scale
        return acc * scale + shift

    h1 = jnp.maximum(bn(conv3x3(x, w1_ref), g1_ref, b1_ref), 0.0)
    h2 = bn(conv3x3(h1, w2_ref), g2_ref, b2_ref)
    out_ref[...] = jnp.maximum(h2 + x, 0.0)                # identity shortcut + relu


def _fold_conv3x3_weights(w_hwio, width):
    """Fold the kw taps of a 3x3 HWIO weight into banded (W*Cin, W*Cout)
    matrices, one per kh tap (W-direction zero padding baked in)."""
    kh_dim, kw_dim, cin, cout = w_hwio.shape
    win = jnp.arange(width)[:, None]
    wout = jnp.arange(width)[None, :]
    kw = win - wout + 1                                    # tap index, pad=1
    valid = (kw >= 0) & (kw < kw_dim)
    kw_idx = jnp.clip(kw, 0, kw_dim - 1)
    g = w_hwio[:, kw_idx]                                  # (3, W, W, Cin, Cout)
    g = g * valid[None, :, :, None, None].astype(w_hwio.dtype)
    g = jnp.transpose(g, (0, 1, 3, 2, 4))                  # (3, W, Cin, W, Cout)
    return g.reshape(kh_dim, width * cin, width * cout)


def basic_block_forward(x_nchw, w1, w2, g1, b1, g2, b2):
    """x_nchw: (N, C, H, W) float32; conv weights HWIO; returns (N, C, H, W)."""
    N, C, H, W = x_nchw.shape
    Cout = w1.shape[-1]
    assert C == Cout, "downsample=None requires in_channels == out_channels"
    WC = W * C
    rows = N * H

    # Lane-dense activation layout: (N*H, W*C); here W*C == 128 exactly.
    x_wc = jnp.transpose(x_nchw, (0, 2, 3, 1)).reshape(rows, WC)

    # Precompute tiny constant operators (done once, outside the kernel).
    w1_fold = _fold_conv3x3_weights(w1, W)                 # (3, WC, WC)
    w2_fold = _fold_conv3x3_weights(w2, W)

    lane_c = jnp.arange(WC) % C
    pool = (lane_c[:, None] == lane_c[None, :]).astype(jnp.float32) / float(N * H * W)

    r = jnp.arange(rows)
    h_of = r % H
    s_up = ((r[:, None] - 1 == r[None, :]) & (h_of[:, None] > 0)).astype(jnp.float32)
    s_dn = ((r[:, None] + 1 == r[None, :]) & (h_of[:, None] < H - 1)).astype(jnp.float32)

    # BN affine params pre-tiled to the folded W*C lane axis.
    g1wc = jnp.tile(g1, W)[None, :]
    b1wc = jnp.tile(b1, W)[None, :]
    g2wc = jnp.tile(g2, W)[None, :]
    b2wc = jnp.tile(b2, W)[None, :]

    full2 = lambda i: (0, 0)
    full3 = lambda i: (0, 0, 0)

    flops = 2 * (2 * 3 * rows * WC * WC + 2 * 2 * rows * rows * WC)
    bytes_accessed = 4 * (2 * rows * WC + 2 * 3 * WC * WC + WC * WC + 2 * rows * rows)
    cost = pl.CostEstimate(flops=flops, transcendentals=2 * WC,
                           bytes_accessed=bytes_accessed)

    out_wc = pl.pallas_call(
        basic_block_kernel,
        out_shape=jax.ShapeDtypeStruct((rows, WC), jnp.float32),
        grid=(1,),
        in_specs=[
            pl.BlockSpec((rows, WC), full2),       # x
            pl.BlockSpec((3, WC, WC), full3),      # folded conv1 weights
            pl.BlockSpec((3, WC, WC), full3),      # folded conv2 weights
            pl.BlockSpec((WC, WC), full2),         # channel pooling matrix
            pl.BlockSpec((rows, rows), full2),     # row shift up (h-1)
            pl.BlockSpec((rows, rows), full2),     # row shift down (h+1)
            pl.BlockSpec((1, WC), full2),          # gamma1 (tiled)
            pl.BlockSpec((1, WC), full2),          # beta1  (tiled)
            pl.BlockSpec((1, WC), full2),          # gamma2 (tiled)
            pl.BlockSpec((1, WC), full2),          # beta2  (tiled)
        ],
        out_specs=pl.BlockSpec((rows, WC), full2),  # lane-dense output store
        compiler_params=pltpu.CompilerParams(
            dimension_semantics=("arbitrary",),
            vmem_limit_bytes=32 * 1024 * 1024),
        cost_estimate=cost,
    )(x_wc, w1_fold, w2_fold, pool, s_up, s_dn, g1wc, b1wc, g2wc, b2wc)

    out_nhwc = out_wc.reshape(N, H, W, C)
    return jnp.transpose(out_nhwc, (0, 3, 1, 2))


def ref_basic_block(x_nchw, w1, w2, g1, b1, g2, b2):
    """Pure-JAX reference (NHWC math) for correctness checking."""
    x = jnp.transpose(x_nchw, (0, 2, 3, 1))

    def conv(h, w):
        return lax.conv_general_dilated(
            h, w, window_strides=(1, 1), padding="SAME",
            dimension_numbers=("NHWC", "HWIO", "NHWC"))

    def bn(h, g, b):
        m = h.mean(axis=(0, 1, 2))
        v = ((h - m) ** 2).mean(axis=(0, 1, 2))
        return (h - m) * (g / jnp.sqrt(v + EPS)) + b

    h = jax.nn.relu(bn(conv(x, w1), g1, b1))
    h = bn(conv(h, w2), g2, b2)
    out = jax.nn.relu(h + x)
    return jnp.transpose(out, (0, 3, 1, 2))


if __name__ == "__main__":
    # Small shapes consistent with the module: N=2, C_in=C_out=8, H=W=16,
    # chosen so the folded lane axis W*C = 128 exactly.
    N, C, H, W = 2, 8, 16, 16
    key = jax.random.PRNGKey(0)
    kx, k1, k2, kg1, kb1, kg2, kb2 = jax.random.split(key, 7)

    x = jax.random.normal(kx, (N, C, H, W), jnp.float32)

    # Conv weights (HWIO), Kaiming-like init (bias=False).
    fan_in = 3 * 3 * C
    w1 = jax.random.normal(k1, (3, 3, C, C), jnp.float32) * (2.0 / fan_in) ** 0.5
    w2 = jax.random.normal(k2, (3, 3, C, C), jnp.float32) * (2.0 / fan_in) ** 0.5

    # BatchNorm affine params (PyTorch default gamma=1, beta=0; perturbed to
    # exercise the affine path).
    g1 = 1.0 + 0.1 * jax.random.normal(kg1, (C,), jnp.float32)
    b1 = 0.1 * jax.random.normal(kb1, (C,), jnp.float32)
    g2 = 1.0 + 0.1 * jax.random.normal(kg2, (C,), jnp.float32)
    b2 = 0.1 * jax.random.normal(kb2, (C,), jnp.float32)

    out = basic_block_forward(x, w1, w2, g1, b1, g2, b2)
    out = jax.block_until_ready(out)

    ref = jax.block_until_ready(ref_basic_block(x, w1, w2, g1, b1, g2, b2))
    assert out.shape == (N, C, H, W)
    assert jnp.allclose(out, ref, atol=2e-4, rtol=2e-4), "mismatch vs reference"

    # TODO(synk): `downsample` is an externally supplied nn.Module (None in the
    # default configuration used here) and stride/expansion are fixed at their
    # defaults, so those branches are not translated.
    print("KERNEL_OK")
</pallas_src>

<mosaic_0001>
module attributes {stable_mosaic.version = 11 : i64} {
  func.func @basic_block_kernel(%arg0: i32, %arg1: memref<32x128xf32, #tpu.memory_space<vmem>>, %arg2: memref<3x128x128xf32, #tpu.memory_space<vmem>>, %arg3: memref<3x128x128xf32, #tpu.memory_space<vmem>>, %arg4: memref<128x128xf32, #tpu.memory_space<vmem>>, %arg5: memref<32x32xf32, #tpu.memory_space<vmem>>, %arg6: memref<32x32xf32, #tpu.memory_space<vmem>>, %arg7: memref<1x128xf32, #tpu.memory_space<vmem>>, %arg8: memref<1x128xf32, #tpu.memory_space<vmem>>, %arg9: memref<1x128xf32, #tpu.memory_space<vmem>>, %arg10: memref<1x128xf32, #tpu.memory_space<vmem>>, %arg11: memref<32x128xf32, #tpu.memory_space<vmem>>) attributes {dimension_semantics = [#tpu.dimension_semantics<arbitrary>], iteration_bounds = array<i64: 1>, scalar_prefetch = 0 : i64, scratch_operands = 0 : i64, tpu.core_type = #tpu.core_type<tc>, window_params = [{pipeline_mode = #tpu.pipeline_mode<synchronous>, transform_indices = @transform_0, window_bounds = array<i64: 32, 128>}, {pipeline_mode = #tpu.pipeline_mode<synchronous>, transform_indices = @transform_1, window_bounds = array<i64: 3, 128, 128>}, {pipeline_mode = #tpu.pipeline_mode<synchronous>, transform_indices = @transform_2, window_bounds = array<i64: 3, 128, 128>}, {pipeline_mode = #tpu.pipeline_mode<synchronous>, transform_indices = @transform_3, window_bounds = array<i64: 128, 128>}, {pipeline_mode = #tpu.pipeline_mode<synchronous>, transform_indices = @transform_4, window_bounds = array<i64: 32, 32>}, {pipeline_mode = #tpu.pipeline_mode<synchronous>, transform_indices = @transform_5, window_bounds = array<i64: 32, 32>}, {pipeline_mode = #tpu.pipeline_mode<synchronous>, transform_indices = @transform_6, window_bounds = array<i64: 1, 128>}, {pipeline_mode = #tpu.pipeline_mode<synchronous>, transform_indices = @transform_7, window_bounds = array<i64: 1, 128>}, {pipeline_mode = #tpu.pipeline_mode<synchronous>, transform_indices = @transform_8, window_bounds = array<i64: 1, 128>}, {pipeline_mode = #tpu.pipeline_mode<synchronous>, transform_indices = @transform_9, window_bounds = array<i64: 1, 128>}, {pipeline_mode = #tpu.pipeline_mode<synchronous>, transform_indices = @transform_10, window_bounds = array<i64: 32, 128>}]} {
    %c0 = arith.constant 0 : index
    %c0_0 = arith.constant 0 : index
    %0 = vector.load %arg1[%c0, %c0_0] : memref<32x128xf32, #tpu.memory_space<vmem>>, vector<32x128xf32>
    %c0_1 = arith.constant 0 : index
    %c0_2 = arith.constant 0 : index
    %1 = vector.load %arg4[%c0_1, %c0_2] : memref<128x128xf32, #tpu.memory_space<vmem>>, vector<128x128xf32>
    %c0_3 = arith.constant 0 : index
    %c0_4 = arith.constant 0 : index
    %2 = vector.load %arg5[%c0_3, %c0_4] : memref<32x32xf32, #tpu.memory_space<vmem>>, vector<32x32xf32>
    %c0_5 = arith.constant 0 : index
    %c0_6 = arith.constant 0 : index
    %3 = vector.load %arg6[%c0_5, %c0_6] : memref<32x32xf32, #tpu.memory_space<vmem>>, vector<32x32xf32>
    %c0_7 = arith.constant 0 : index
    %c0_8 = arith.constant 0 : index
    %c0_9 = arith.constant 0 : index
    %4 = vector.load %arg2[%c0_7, %c0_8, %c0_9] : memref<3x128x128xf32, #tpu.memory_space<vmem>>, vector<1x128x128xf32>
    %5 = vector.shape_cast %4 : vector<1x128x128xf32> to vector<128x128xf32>
    %cst = arith.constant dense<0.000000e+00> : vector<32x128xf32>
    %6 = tpu.matmul %0, %5, %cst {dimension_numbers = #tpu.dot_dimension_numbers<[1], [0], [0], [1], [0, 0, 1, 1], [], []>} : vector<32x128xf32>, vector<128x128xf32>, vector<32x128xf32> -> vector<32x128xf32>
    %c1 = arith.constant 1 : index
    %c0_10 = arith.constant 0 : index
    %c0_11 = arith.constant 0 : index
    %7 = vector.load %arg2[%c1, %c0_10, %c0_11] : memref<3x128x128xf32, #tpu.memory_space<vmem>>, vector<1x128x128xf32>
    %8 = vector.shape_cast %7 : vector<1x128x128xf32> to vector<128x128xf32>
    %cst_12 = arith.constant dense<0.000000e+00> : vector<32x128xf32>
    %9 = tpu.matmul %0, %8, %cst_12 {dimension_numbers = #tpu.dot_dimension_numbers<[1], [0], [0], [1], [0, 0, 1, 1], [], []>} : vector<32x128xf32>, vector<128x128xf32>, vector<32x128xf32> -> vector<32x128xf32>
    %c2 = arith.constant 2 : index
    %c0_13 = arith.constant 0 : index
    %c0_14 = arith.constant 0 : index
    %10 = vector.load %arg2[%c2, %c0_13, %c0_14] : memref<3x128x128xf32, #tpu.memory_space<vmem>>, vector<1x128x128xf32>
    %11 = vector.shape_cast %10 : vector<1x128x128xf32> to vector<128x128xf32>
    %cst_15 = arith.constant dense<0.000000e+00> : vector<32x128xf32>
    %12 = tpu.matmul %0, %11, %cst_15 {dimension_numbers = #tpu.dot_dimension_numbers<[1], [0], [0], [1], [0, 0, 1, 1], [], []>} : vector<32x128xf32>, vector<128x128xf32>, vector<32x128xf32> -> vector<32x128xf32>
    %cst_16 = arith.constant dense<0.000000e+00> : vector<32x128xf32>
    %13 = tpu.matmul %2, %6, %cst_16 {dimension_numbers = #tpu.dot_dimension_numbers<[1], [0], [0], [1], [0, 0, 1, 1], [], []>} : vector<32x32xf32>, vector<32x128xf32>, vector<32x128xf32> -> vector<32x128xf32>
    %14 = arith.addf %13, %9 : vector<32x128xf32>
    %cst_17 = arith.constant dense<0.000000e+00> : vector<32x128xf32>
    %15 = tpu.matmul %3, %12, %cst_17 {dimension_numbers = #tpu.dot_dimension_numbers<[1], [0], [0], [1], [0, 0, 1, 1], [], []>} : vector<32x32xf32>, vector<32x128xf32>, vector<32x128xf32> -> vector<32x128xf32>
    %16 = arith.addf %14, %15 : vector<32x128xf32>
    %cst_18 = arith.constant dense<0.000000e+00> : vector<128xf32>
    %17 = vector.multi_reduction <add>, %16, %cst_18 [0] : vector<32x128xf32> to vector<128xf32>
    %18 = vector.shape_cast %17 : vector<128xf32> to vector<1x128xf32>
    %19 = arith.mulf %16, %16 : vector<32x128xf32>
    %cst_19 = arith.constant dense<0.000000e+00> : vector<128xf32>
    %20 = vector.multi_reduction <add>, %19, %cst_19 [0] : vector<32x128xf32> to vector<128xf32>
    %21 = vector.shape_cast %20 : vector<128xf32> to vector<1x128xf32>
    %cst_20 = arith.constant dense<0.000000e+00> : vector<1x128xf32>
    %22 = tpu.matmul %18, %1, %cst_20 {dimension_numbers = #tpu.dot_dimension_numbers<[1], [0], [0], [1], [0, 0, 1, 1], [], []>} : vector<1x128xf32>, vector<128x128xf32>, vector<1x128xf32> -> vector<1x128xf32>
    %cst_21 = arith.constant dense<0.000000e+00> : vector<1x128xf32>
    %23 = tpu.matmul %21, %1, %cst_21 {dimension_numbers = #tpu.dot_dimension_numbers<[1], [0], [0], [1], [0, 0, 1, 1], [], []>} : vector<1x128xf32>, vector<128x128xf32>, vector<1x128xf32> -> vector<1x128xf32>
    %24 = arith.mulf %22, %22 : vector<1x128xf32>
    %25 = arith.subf %23, %24 : vector<1x128xf32>
    %c0_22 = arith.constant 0 : index
    %c0_23 = arith.constant 0 : index
    %26 = vector.load %arg7[%c0_22, %c0_23] : memref<1x128xf32, #tpu.memory_space<vmem>>, vector<1x128xf32>
    %cst_24 = arith.constant 9.99999974E-6 : f32
    %27 = vector.broadcast %cst_24 : f32 to vector<1x128xf32>
    %28 = arith.addf %25, %27 : vector<1x128xf32>
    %29 = math.rsqrt %28 : vector<1x128xf32>
    %30 = arith.mulf %26, %29 : vector<1x128xf32>
    %c0_25 = arith.constant 0 : index
    %c0_26 = arith.constant 0 : index
    %31 = vector.load %arg8[%c0_25, %c0_26] : memref<1x128xf32, #tpu.memory_space<vmem>>, vector<1x128xf32>
    %32 = arith.mulf %22, %30 : vector<1x128xf32>
    %33 = arith.subf %31, %32 : vector<1x128xf32>
    %34 = vector.broadcast %30 : vector<1x128xf32> to vector<32x128xf32>
    %35 = arith.mulf %16, %34 : vector<32x128xf32>
    %36 = vector.broadcast %33 : vector<1x128xf32> to vector<32x128xf32>
    %37 = arith.addf %35, %36 : vector<32x128xf32>
    %cst_27 = arith.constant 0.000000e+00 : f32
    %38 = vector.broadcast %cst_27 : f32 to vector<32x128xf32>
    %39 = arith.maximumf %37, %38 : vector<32x128xf32>
    %c0_28 = arith.constant 0 : index
    %c0_29 = arith.constant 0 : index
    %c0_30 = arith.constant 0 : index
    %40 = vector.load %arg3[%c0_28, %c0_29, %c0_30] : memref<3x128x128xf32, #tpu.memory_space<vmem>>, vector<1x128x128xf32>
    %41 = vector.shape_cast %40 : vector<1x128x128xf32> to vector<128x128xf32>
    %cst_31 = arith.constant dense<0.000000e+00> : vector<32x128xf32>
    %42 = tpu.matmul %39, %41, %cst_31 {dimension_numbers = #tpu.dot_dimension_numbers<[1], [0], [0], [1], [0, 0, 1, 1], [], []>} : vector<32x128xf32>, vector<128x128xf32>, vector<32x128xf32> -> vector<32x128xf32>
    %c1_32 = arith.constant 1 : index
    %c0_33 = arith.constant 0 : index
    %c0_34 = arith.constant 0 : index
    %43 = vector.load %arg3[%c1_32, %c0_33, %c0_34] : memref<3x128x128xf32, #tpu.memory_space<vmem>>, vector<1x128x128xf32>
    %44 = vector.shape_cast %43 : vector<1x128x128xf32> to vector<128x128xf32>
    %cst_35 = arith.constant dense<0.000000e+00> : vector<32x128xf32>
    %45 = tpu.matmul %39, %44, %cst_35 {dimension_numbers = #tpu.dot_dimension_numbers<[1], [0], [0], [1], [0, 0, 1, 1], [], []>} : vector<32x128xf32>, vector<128x128xf32>, vector<32x128xf32> -> vector<32x128xf32>
    %c2_36 = arith.constant 2 : index
    %c0_37 = arith.constant 0 : index
    %c0_38 = arith.constant 0 : index
    %46 = vector.load %arg3[%c2_36, %c0_37, %c0_38] : memref<3x128x128xf32, #tpu.memory_space<vmem>>, vector<1x128x128xf32>
    %47 = vector.shape_cast %46 : vector<1x128x128xf32> to vector<128x128xf32>
    %cst_39 = arith.constant dense<0.000000e+00> : vector<32x128xf32>
    %48 = tpu.matmul %39, %47, %cst_39 {dimension_numbers = #tpu.dot_dimension_numbers<[1], [0], [0], [1], [0, 0, 1, 1], [], []>} : vector<32x128xf32>, vector<128x128xf32>, vector<32x128xf32> -> vector<32x128xf32>
    %cst_40 = arith.constant dense<0.000000e+00> : vector<32x128xf32>
    %49 = tpu.matmul %2, %42, %cst_40 {dimension_numbers = #tpu.dot_dimension_numbers<[1], [0], [0], [1], [0, 0, 1, 1], [], []>} : vector<32x32xf32>, vector<32x128xf32>, vector<32x128xf32> -> vector<32x128xf32>
    %50 = arith.addf %49, %45 : vector<32x128xf32>
    %cst_41 = arith.constant dense<0.000000e+00> : vector<32x128xf32>
    %51 = tpu.matmul %3, %48, %cst_41 {dimension_numbers = #tpu.dot_dimension_numbers<[1], [0], [0], [1], [0, 0, 1, 1], [], []>} : vector<32x32xf32>, vector<32x128xf32>, vector<32x128xf32> -> vector<32x128xf32>
    %52 = arith.addf %50, %51 : vector<32x128xf32>
    %cst_42 = arith.constant dense<0.000000e+00> : vector<128xf32>
    %53 = vector.multi_reduction <add>, %52, %cst_42 [0] : vector<32x128xf32> to vector<128xf32>
    %54 = vector.shape_cast %53 : vector<128xf32> to vector<1x128xf32>
    %55 = arith.mulf %52, %52 : vector<32x128xf32>
    %cst_43 = arith.constant dense<0.000000e+00> : vector<128xf32>
    %56 = vector.multi_reduction <add>, %55, %cst_43 [0] : vector<32x128xf32> to vector<128xf32>
    %57 = vector.shape_cast %56 : vector<128xf32> to vector<1x128xf32>
    %cst_44 = arith.constant dense<0.000000e+00> : vector<1x128xf32>
    %58 = tpu.matmul %54, %1, %cst_44 {dimension_numbers = #tpu.dot_dimension_numbers<[1], [0], [0], [1], [0, 0, 1, 1], [], []>} : vector<1x128xf32>, vector<128x128xf32>, vector<1x128xf32> -> vector<1x128xf32>
    %cst_45 = arith.constant dense<0.000000e+00> : vector<1x128xf32>
    %59 = tpu.matmul %57, %1, %cst_45 {dimension_numbers = #tpu.dot_dimension_numbers<[1], [0], [0], [1], [0, 0, 1, 1], [], []>} : vector<1x128xf32>, vector<128x128xf32>, vector<1x128xf32> -> vector<1x128xf32>
    %60 = arith.mulf %58, %58 : vector<1x128xf32>
    %61 = arith.subf %59, %60 : vector<1x128xf32>
    %c0_46 = arith.constant 0 : index
    %c0_47 = arith.constant 0 : index
    %62 = vector.load %arg9[%c0_46, %c0_47] : memref<1x128xf32, #tpu.memory_space<vmem>>, vector<1x128xf32>
    %cst_48 = arith.constant 9.99999974E-6 : f32
    %63 = vector.broadcast %cst_48 : f32 to vector<1x128xf32>
    %64 = arith.addf %61, %63 : vector<1x128xf32>
    %65 = math.rsqrt %64 : vector<1x128xf32>
    %66 = arith.mulf %62, %65 : vector<1x128xf32>
    %c0_49 = arith.constant 0 : index
    %c0_50 = arith.constant 0 : index
    %67 = vector.load %arg10[%c0_49, %c0_50] : memref<1x128xf32, #tpu.memory_space<vmem>>, vector<1x128xf32>
    %68 = arith.mulf %58, %66 : vector<1x128xf32>
    %69 = arith.subf %67, %68 : vector<1x128xf32>
    %70 = vector.broadcast %66 : vector<1x128xf32> to vector<32x128xf32>
    %71 = arith.mulf %52, %70 : vector<32x128xf32>
    %72 = vector.broadcast %69 : vector<1x128xf32> to vector<32x128xf32>
    %73 = arith.addf %71, %72 : vector<32x128xf32>
    %74 = arith.addf %73, %0 : vector<32x128xf32>
    %cst_51 = arith.constant 0.000000e+00 : f32
    %75 = vector.broadcast %cst_51 : f32 to vector<32x128xf32>
    %76 = arith.maximumf %74, %75 : vector<32x128xf32>
    %c0_52 = arith.constant 0 : index
    %c0_53 = arith.constant 0 : index
    %77 = vector.load %arg11[%c0_52, %c0_53] : memref<32x128xf32, #tpu.memory_space<vmem>>, vector<32x128xf32>
    tpu.vector_store %arg11[%c0_52, %c0_53], %76 {strides = array<i32>} : memref<32x128xf32, #tpu.memory_space<vmem>>, vector<32x128xf32>,
    return
  }
  func.func @transform_0(%arg0: i32) -> (i32, i32) {
    %c0_i32 = arith.constant 0 : i32
    %c0_i32_0 = arith.constant 0 : i32
    %c0_i32_1 = arith.constant 0 : i32
    return %c0_i32, %c0_i32_0 : i32, i32
  }
  func.func @transform_1(%arg0: i32) -> (i32, i32, i32) {
    %c0_i32 = arith.constant 0 : i32
    %c0_i32_0 = arith.constant 0 : i32
    %c0_i32_1 = arith.constant 0 : i32
    %c0_i32_2 = arith.constant 0 : i32
    return %c0_i32, %c0_i32_0, %c0_i32_1 : i32, i32, i32
  }
  func.func @transform_2(%arg0: i32) -> (i32, i32, i32) {
    %c0_i32 = arith.constant 0 : i32
    %c0_i32_0 = arith.constant 0 : i32
    %c0_i32_1 = arith.constant 0 : i32
    %c0_i32_2 = arith.constant 0 : i32
    return %c0_i32, %c0_i32_0, %c0_i32_1 : i32, i32, i32
  }
  func.func @transform_3(%arg0: i32) -> (i32, i32) {
    %c0_i32 = arith.constant 0 : i32
    %c0_i32_0 = arith.constant 0 : i32
    %c0_i32_1 = arith.constant 0 : i32
    return %c0_i32, %c0_i32_0 : i32, i32
  }
  func.func @transform_4(%arg0: i32) -> (i32, i32) {
    %c0_i32 = arith.constant 0 : i32
    %c0_i32_0 = arith.constant 0 : i32
    %c0_i32_1 = arith.constant 0 : i32
    return %c0_i32, %c0_i32_0 : i32, i32
  }
  func.func @transform_5(%arg0: i32) -> (i32, i32) {
    %c0_i32 = arith.constant 0 : i32
    %c0_i32_0 = arith.constant 0 : i32
    %c0_i32_1 = arith.constant 0 : i32
    return %c0_i32, %c0_i32_0 : i32, i32
  }
  func.func @transform_6(%arg0: i32) -> (i32, i32) {
    %c0_i32 = arith.constant 0 : i32
    %c0_i32_0 = arith.constant 0 : i32
    %c0_i32_1 = arith.constant 0 : i32
    return %c0_i32, %c0_i32_0 : i32, i32
  }
  func.func @transform_7(%arg0: i32) -> (i32, i32) {
    %c0_i32 = arith.constant 0 : i32
    %c0_i32_0 = arith.constant 0 : i32
    %c0_i32_1 = arith.constant 0 : i32
    return %c0_i32, %c0_i32_0 : i32, i32
  }
  func.func @transform_8(%arg0: i32) -> (i32, i32) {
    %c0_i32 = arith.constant 0 : i32
    %c0_i32_0 = arith.constant 0 : i32
    %c0_i32_1 = arith.constant 0 : i32
    return %c0_i32, %c0_i32_0 : i32, i32
  }
  func.func @transform_9(%arg0: i32) -> (i32, i32) {
    %c0_i32 = arith.constant 0 : i32
    %c0_i32_0 = arith.constant 0 : i32
    %c0_i32_1 = arith.constant 0 : i32
    return %c0_i32, %c0_i32_0 : i32, i32
  }
  func.func @transform_10(%arg0: i32) -> (i32, i32) {
    %c0_i32 = arith.constant 0 : i32
    %c0_i32_0 = arith.constant 0 : i32
    %c0_i32_1 = arith.constant 0 : i32
    return %c0_i32, %c0_i32_0 : i32, i32
  }
}

</mosaic_0001>

<bundles_post_ra>
// kernel: tpu_custom_call.1
= control target key start
LH: loop header
LB: loop body
LE: loop exit
PB: predicated region body
PF: predicated region fallthrough
CT: control target
= control target key end

     0   :  { %15 = vsyncpa [#allocation3], 0  ;;  %s3118_s0 = inlined_call_operand.hbm [shape: f32[32,128], index: 0, kind: input, shape index: {}]   ;;  %s3119_s1 = inlined_call_operand.hbm [shape: f32[3,128,128], index: 1, kind: input, shape index: {}]   ;;  %s3120_s2 = inlined_call_operand.hbm [shape: f32[3,128,128], index: 2, kind: input, shape index: {}]   ;;  %s3121_s3 = inlined_call_operand.hbm [shape: f32[128,128], index: 3, kind: input, shape index: {}]   ;;  %s3122_s4 = inlined_call_operand.hbm [shape: f32[32,32], index: 4, kind: input, shape index: {}]   ;;  %s3123_s5 = inlined_call_operand.hbm [shape: f32[32,32], index: 5, kind: input, shape index: {}]   ;;  %s3124_s6 = inlined_call_operand.vmem [shape: f32[1,128], index: 6, kind: input, shape index: {}]   ;;  %s3125_s7 = inlined_call_operand.vmem [shape: f32[1,128], index: 7, kind: input, shape index: {}]   ;;  %s3126_s8 = inlined_call_operand.vmem [shape: f32[1,128], index: 8, kind: input, shape index: {}]   ;;  %s3127_s9 = inlined_call_operand.vmem [shape: f32[1,128], index: 9, kind: input, shape index: {}]   ;;  %s3128_s10 = inlined_call_operand.hbm [shape: f32[32,128], index: 10, kind: output, shape index: {}]  }
   0x1   :  { %16 = vsyncpa [#allocation6], 0 }
   0x2   :  { %17 = vsyncpa [#allocation9], 0 }
   0x3   :  { %18 = vsyncpa [#allocation12], 0 }
   0x4   :  { %19 = vsyncpa [#allocation4], 0  ;;  %s2724_s13 = smov [#allocation5]   ;;  %s2725_s15 = smov [#allocation8]  }
   0x5   :  { %s37_s14 = sshll.u32 %s2724_s13, 4  ;;  %s61_s16 = sshll.u32 %s2725_s15, 4  ;;  %s38_s14 = int_to_ptr.vmem [resolvable:$true] %s37_s14  ;;  %s2791_s16 = int_to_ptr.vmem [resolvable:$true] %s61_s16 }
   0x6   :  { %s2560_s19 = scalar_lea.hbm %s3119_s1, 6144 }
   0x7   :  { %p2561_p0 = scmp.ne.s32.totalorder %s3119_s1, %s2560_s19  ;;  %p2564_p1 = scmp.lt.u32.totalorder %s2560_s19, %s3119_s1 }
   0x9   :  { %p2566_p2 = pnand %p2564_p1, %p2561_p0 }
   0xb   :  { %2569 = shalt.err (!%p2566_p2)
}
   0xc   :  { %s2570_s24 = scalar_lea.vmem %s38_s14, 6144  ;;  %p2575_p4 = scmp.lt.s32.totalorder %s38_s14, %s38_s14 }
   0xd   :  { %p2571_p3 = scmp.ne.s32.totalorder %s38_s14, %s2570_s24  ;;  %p2576_p5 = scmp.lt.s32.totalorder %s2570_s24, %s2570_s24 }
   0xf   :  { %p2577_p6 = por %p2576_p5, %p2575_p4 }
  0x11   :  { %p2578_p7 = pnand %p2577_p6, %p2571_p3 }
  0x13   :  { %2581 = shalt.err (!%p2578_p7)
}
  0x14   :  { %s2726_s25 = smov 128   ;;  %s2727_s26 = smov 8  }
  0x15   :  { %43 = dma.hbm_to_vmem [thread:$0]  %s3119_s1, 6144, %s38_s14, [#allocation6], %s2726_s25, %s2726_s25, %s2727_s26  }
  0x16   :  { %s2582_s11 = scalar_lea.hbm %s3121_s3, 2048 }
  0x17   :  { %p2583_p8 = scmp.ne.s32.totalorder %s3121_s3, %s2582_s11  ;;  %p2586_p9 = scmp.lt.u32.totalorder %s2582_s11, %s3121_s3 }
  0x19   :  { %p2588_p10 = pnand %p2586_p9, %p2583_p8 }
  0x1b   :  { %2591 = shalt.err (!%p2588_p10)
}
  0x1c   :  { %s2592_s18 = scalar_lea.vmem %s2791_s16, 2048  ;;  %p2597_p12 = scmp.lt.s32.totalorder %s2791_s16, %s2791_s16 }
  0x1d   :  { %p2593_p11 = scmp.ne.s32.totalorder %s2791_s16, %s2592_s18  ;;  %p2598_p13 = scmp.lt.s32.totalorder %s2592_s18, %s2592_s18 }
  0x1f   :  { %p2599_p0 = por %p2598_p13, %p2597_p12 }
  0x21   :  { %p2600_p1 = pnand %p2599_p0, %p2593_p11 }
  0x23   :  { %2603 = shalt.err (!%p2600_p1)
}
  0x24   :  { %67 = dma.hbm_to_vmem [thread:$0]  %s3121_s3, 2048, %s2791_s16, [#allocation9], %s2726_s25, %s2726_s25, %s2727_s26  }
  0x25   :  { %s2728_s19 = smov [#allocation2]   ;;  %s2729_s21 = smov [#allocation7]  }
  0x26   :  { %s25_s20 = sshll.u32 %s2728_s19, 4  ;;  %s49_s22 = sshll.u32 %s2729_s21, 4  ;;  %s26_s20 = int_to_ptr.vmem [resolvable:$true] %s25_s20  ;;  %s2828_s22 = int_to_ptr.vmem [resolvable:$true] %s49_s22 }
  0x27   :  { %s2604_s27 = scalar_lea.hbm %s3118_s0, 512 }
  0x28   :  { %p2605_p2 = scmp.ne.s32.totalorder %s3118_s0, %s2604_s27  ;;  %p2608_p3 = scmp.lt.u32.totalorder %s2604_s27, %s3118_s0 }
  0x2a   :  { %p2610_p4 = pnand %p2608_p3, %p2605_p2 }
  0x2c   :  { %2613 = shalt.err (!%p2610_p4)
}
  0x2d   :  { %s2614_s3 = scalar_lea.vmem %s26_s20, 512  ;;  %p2619_p6 = scmp.lt.s32.totalorder %s26_s20, %s26_s20 }
  0x2e   :  { %p2615_p5 = scmp.ne.s32.totalorder %s26_s20, %s2614_s3  ;;  %p2620_p7 = scmp.lt.s32.totalorder %s2614_s3, %s2614_s3 }
  0x30   :  { %p2621_p8 = por %p2620_p7, %p2619_p6 }
  0x32   :  { %p2622_p9 = pnand %p2621_p8, %p2615_p5 }
  0x34   :  { %2625 = shalt.err (!%p2622_p9)
}
  0x35   :  { %31 = dma.hbm_to_vmem [thread:$0]  %s3118_s0, 512, %s26_s20, [#allocation3], %s2726_s25, %s2726_s25, %s2727_s26  }
  0x36   :  { %s2626_s17 = scalar_lea.hbm %s3120_s2, 6144 }
  0x37   :  { %p2627_p10 = scmp.ne.s32.totalorder %s3120_s2, %s2626_s17  ;;  %p2630_p11 = scmp.lt.u32.totalorder %s2626_s17, %s3120_s2 }
  0x39   :  { %p2632_p12 = pnand %p2630_p11, %p2627_p10 }
  0x3b   :  { %2635 = shalt.err (!%p2632_p12)
}
  0x3c   :  { %s2636_s21 = scalar_lea.vmem %s2828_s22, 6144  ;;  %p2641_p0 = scmp.lt.s32.totalorder %s2828_s22, %s2828_s22 }
  0x3d   :  { %p2637_p13 = scmp.ne.s32.totalorder %s2828_s22, %s2636_s21  ;;  %p2642_p1 = scmp.lt.s32.totalorder %s2636_s21, %s2636_s21 }
  0x3f   :  { %p2643_p2 = por %p2642_p1, %p2641_p0 }
  0x41   :  { %p2644_p3 = pnand %p2643_p2, %p2637_p13 }
  0x43   :  { %2647 = shalt.err (!%p2644_p3)
}
  0x44   :  { %55 = dma.hbm_to_vmem [thread:$0]  %s3120_s2, 6144, %s2828_s22, [#allocation6], %s2726_s25, %s2726_s25, %s2727_s26  }
  0x45   :  { %s2730_s23 = smov [#allocation10]   ;;  %s2731_s27 = smov [#allocation11]  }
  0x46   :  { %s73_s24 = sshll.u32 %s2730_s23, 4  ;;  %s85_s28 = sshll.u32 %s2731_s27, 4  ;;  %s74_s24 = int_to_ptr.vmem [resolvable:$true] %s73_s24  ;;  %s2865_s28 = int_to_ptr.vmem [resolvable:$true] %s85_s28 }
  0x47   :  { %s2648_s11 = scalar_lea.hbm %s3122_s4, 512 }
  0x48   :  { %p2649_p4 = scmp.ne.s32.totalorder %s3122_s4, %s2648_s11  ;;  %p2652_p5 = scmp.lt.u32.totalorder %s2648_s11, %s3122_s4 }
  0x4a   :  { %p2654_p6 = pnand %p2652_p5, %p2649_p4 }
  0x4c   :  { %2657 = shalt.err (!%p2654_p6)
}
  0x4d   :  { %s2658_s2 = scalar_lea.vmem %s74_s24, 512  ;;  %p2663_p8 = scmp.lt.s32.totalorder %s74_s24, %s74_s24 }
  0x4e   :  { %p2659_p7 = scmp.ne.s32.totalorder %s74_s24, %s2658_s2  ;;  %p2664_p9 = scmp.lt.s32.totalorder %s2658_s2, %s2658_s2 }
  0x50   :  { %p2665_p10 = por %p2664_p9, %p2663_p8 }
  0x52   :  { %p2666_p11 = pnand %p2665_p10, %p2659_p7 }
  0x54   :  { %2669 = shalt.err (!%p2666_p11)
}
  0x55   :  { %79 = dma.hbm_to_vmem [thread:$0]  %s3122_s4, 512, %s74_s24, [#allocation9], %s2726_s25, %s2726_s25, %s2727_s26  }
  0x56   :  { %s2670_s1 = scalar_lea.hbm %s3123_s5, 512 }
  0x57   :  { %p2671_p12 = scmp.ne.s32.totalorder %s3123_s5, %s2670_s1  ;;  %p2674_p13 = scmp.lt.u32.totalorder %s2670_s1, %s3123_s5 }
  0x59   :  { %p2676_p0 = pnand %p2674_p13, %p2671_p12 }
  0x5b   :  { %2679 = shalt.err (!%p2676_p0)
}
  0x5c   :  { %s2680_s20 = scalar_lea.vmem %s2865_s28, 512  ;;  %p2685_p2 = scmp.lt.s32.totalorder %s2865_s28, %s2865_s28 }
  0x5d   :  { %p2681_p1 = scmp.ne.s32.totalorder %s2865_s28, %s2680_s20  ;;  %p2686_p3 = scmp.lt.s32.totalorder %s2680_s20, %s2680_s20 }
  0x5f   :  { %p2687_p4 = por %p2686_p3, %p2685_p2 }
  0x61   :  { %p2688_p5 = pnand %p2687_p4, %p2681_p1 }
  0x63   :  { %2691 = shalt.err (!%p2688_p5)
}
  0x64   :  { %91 = dma.hbm_to_vmem [thread:$0]  %s3123_s5, 512, %s2865_s28, [#allocation12], %s2726_s25, %s2726_s25, %s2727_s26  }
  0x65   :  { %2714 = dma.done.wait [#allocation3], 512  }
  0x66   :  { %2715 = vsyncadd [#allocation3], 4294966784 }
  0x67   :  { %2716 = dma.done.wait [#allocation6], 12288  }
  0x68   :  { %2717 = vsyncadd [#allocation6], 4294955008 }
  0x69   :  { %2718 = dma.done.wait [#allocation9], 2560  }
  0x6a   :  { %2719 = vsyncadd [#allocation9], 4294964736 }
  0x6b   :  { %2720 = dma.done.wait [#allocation12], 512  }
  0x6c   :  { %2721 = vsyncadd [#allocation12], 4294966784  ;;  %v146_v0 = vld [vmem:[#allocation5] sm:$0xff]  ;;  %v147_v1 = vld [vmem:[#allocation5 + $0x8] sm:$0xff]  ;;  %vm451_vm0 = vcmask 261120   ;;  %vm2733_vm1 = vmmov 0  }
  0x6d   :  { %v148_v2 = vld [vmem:[#allocation5 + $0x10] sm:$0xff]  ;;  %v2207_v3 = vpack.c.bf16 %v147_v1, %v146_v0  ;;  %v149_v4 = vld [vmem:[#allocation5 + $0x18] sm:$0xff]  ;;  %v150_v6 = vld [vmem:[#allocation5 + $0x20] sm:$0xff] }
  0x6e   :  { %v2211_v5 = vpack.c.bf16 %v149_v4, %v148_v2  ;;  %v151_v7 = vld [vmem:[#allocation5 + $0x28] sm:$0xff]  ;;  %v2902_v9 = vld [vmem:[#allocation2] sm:$0xff]  ;;  %v152_v10 = vld [vmem:[#allocation5 + $0x30] sm:$0xff] }
  0x6f   :  { %2208 = vmatprep.subr.bf16.mxu0 %v2207_v3  ;;  %v2215_v8 = vpack.c.bf16 %v151_v7, %v150_v6  ;;  %v153_v11 = vld [vmem:[#allocation5 + $0x38] sm:$0xff]  ;;  %1815 = vmatprep.mubr.f32.mxu0 %v2902_v9  ;;  %v154_v13 = vld [vmem:[#allocation5 + $0x40] sm:$0xff]  ;;  %v155_v14 = vld [vmem:[#allocation5 + $0x48] sm:$0xff] }
  0x70   :  { %2210 = vmatpush3.bf16.msra.mxu0 %v2207_v3  ;;  %1853 = vmatprep.mubr.f32.mxu1 %v2902_v9  ;;  %v2219_v12 = vpack.c.bf16 %v153_v11, %v152_v10  ;;  %v248_v15 = vld [vmem:[#allocation5 + $0x80] sm:$0xff]  ;;  %v249_v16 = vld [vmem:[#allocation5 + $0x88] sm:$0xff]  ;;  %v250_v17 = vld [vmem:[#allocation5 + $0x90] sm:$0xff]  ;;  %v2223_v18 = vpack.c.bf16 %v155_v14, %v154_v13 }
  0x71   :  { %2212 = vmatprep.subr.bf16.mxu0 %v2211_v5  ;;  %v156_v19 = vld [vmem:[#allocation5 + $0x50] sm:$0xff]  ;;  %v2239_v20 = vpack.c.bf16 %v249_v16, %v248_v15  ;;  %v251_v21 = vld [vmem:[#allocation5 + $0x98] sm:$0xff]  ;;  %v252_v24 = vld [vmem:[#allocation5 + $0xa0] sm:$0xff]  ;;  %v2732_v16 = vmov 0.0|0.0  }
  0x72   :  { %v157_v22 = vld [vmem:[#allocation5 + $0x58] sm:$0xff]  ;;  %v2243_v23 = vpack.c.bf16 %v251_v21, %v250_v17  ;;  %v253_v25 = vld [vmem:[#allocation5 + $0xa8] sm:$0xff]  ;;  %v158_v27 = vld [vmem:[#allocation5 + $0x60] sm:$0xff] }
  0x73   :  { %2240 = vmatprep.subr.bf16.mxu1 %v2239_v20  ;;  %v2227_v26 = vpack.c.bf16 %v157_v22, %v156_v19  ;;  %v2247_v28 = vpack.c.bf16 %v253_v25, %v252_v24  ;;  %v159_v29 = vld [vmem:[#allocation5 + $0x68] sm:$0xff]  ;;  %v254_v30 = vld [vmem:[#allocation5 + $0xb0] sm:$0xff]  ;;  %v255_v31 = vld [vmem:[#allocation5 + $0xb8] sm:$0xff] }
  0x74   :  { %2214 = vmatpush3.bf16.msra.mxu0 %v2211_v5  ;;  %2242 = vmatpush3.bf16.msra.mxu1 %v2239_v20  ;;  %v2231_v32 = vpack.c.bf16 %v159_v29, %v158_v27  ;;  %v160_v33 = vld [vmem:[#allocation5 + $0x70] sm:$0xff]  ;;  %v2251_v34 = vpack.c.bf16 %v255_v31, %v254_v30  ;;  %v161_v35 = vld [vmem:[#allocation5 + $0x78] sm:$0xff]  ;;  %v256_v36 = vld [vmem:[#allocation5 + $0xc0] sm:$0xff] }
  0x75   :  { %2216 = vmatprep.subr.bf16.mxu0 %v2215_v8  ;;  %2244 = vmatprep.subr.bf16.mxu1 %v2243_v23  ;;  %v257_v37 = vld [vmem:[#allocation5 + $0xc8] sm:$0xff]  ;;  %v2235_v38 = vpack.c.bf16 %v161_v35, %v160_v33  ;;  %v350_v39 = vld [vmem:[#allocation5 + $0x100] sm:$0xff]  ;;  %v258_v42 = vld [vmem:[#allocation5 + $0xd0] sm:$0xff] }
  0x76   :  { %v2255_v40 = vpack.c.bf16 %v257_v37, %v256_v36  ;;  %v351_v41 = vld [vmem:[#allocation5 + $0x108] sm:$0xff]  ;;  %v259_v43 = vld [vmem:[#allocation5 + $0xd8] sm:$0xff]  ;;  %v352_v46 = vld [vmem:[#allocation5 + $0x110] sm:$0xff] }
  0x77   :  { %v2271_v44 = vpack.c.bf16 %v351_v41, %v350_v39  ;;  %v2259_v45 = vpack.c.bf16 %v259_v43, %v258_v42  ;;  %v353_v47 = vld [vmem:[#allocation5 + $0x118] sm:$0xff]  ;;  %v260_v48 = vld [vmem:[#allocation5 + $0xe0] sm:$0xff]  ;;  %v261_v49 = vld [vmem:[#allocation5 + $0xe8] sm:$0xff] }
  0x78   :  { %2218 = vmatpush3.bf16.msra.mxu0 %v2215_v8  ;;  %2246 = vmatpush3.bf16.msra.mxu1 %v2243_v23  ;;  %v2906_v50 = vld [vmem:[#allocation2 + $0x8] sm:$0xff]  ;;  %v2275_v51 = vpack.c.bf16 %v353_v47, %v352_v46  ;;  %v2908_v52 = vld [vmem:[#allocation2 + $0x10] sm:$0xff]  ;;  %v354_v53 = vld [vmem:[#allocation5 + $0x120] sm:$0xff]  ;;  %v2263_v55 = vpack.c.bf16 %v261_v49, %v260_v48 }
  0x79   :  { %2220 = vmatprep.subr.bf16.mxu0 %v2219_v12  ;;  %2248 = vmatprep.subr.bf16.mxu1 %v2247_v28  ;;  %v355_v54 = vld [vmem:[#allocation5 + $0x128] sm:$0xff]  ;;  %v2912_v56 = vld [vmem:[#allocation2 + $0x18] sm:$0xff]  ;;  %v356_v58 = vld [vmem:[#allocation5 + $0x130] sm:$0xff] }
  0x7a   :  { %v2279_v57 = vpack.c.bf16 %v355_v54, %v354_v53  ;;  %v357_v59 = vld [vmem:[#allocation5 + $0x138] sm:$0xff]  ;;  %v358_v61 = vld [vmem:[#allocation5 + $0x140] sm:$0xff]  ;;  %v359_v62 = vld [vmem:[#allocation5 + $0x148] sm:$0xff] }
  0x7b   :  { %v2283_v60 = vpack.c.bf16 %v357_v59, %v356_v58  ;;  %v2287_v63 = vpack.c.bf16 %v359_v62, %v358_v61  ;;  %v360_v0 = vld [vmem:[#allocation5 + $0x150] sm:$0xff]  ;;  %v361_v1 = vld [vmem:[#allocation5 + $0x158] sm:$0xff]  ;;  %v362_v3 = vld [vmem:[#allocation5 + $0x160] sm:$0xff] }
  0x7c   :  { %2222 = vmatpush3.bf16.msra.mxu0 %v2219_v12  ;;  %2250 = vmatpush3.bf16.msra.mxu1 %v2247_v28  ;;  %v2291_v2 = vpack.c.bf16 %v361_v1, %v360_v0  ;;  %v363_v4 = vld [vmem:[#allocation5 + $0x168] sm:$0xff]  ;;  %v364_v6 = vld [vmem:[#allocation5 + $0x170] sm:$0xff]  ;;  %v365_v7 = vld [vmem:[#allocation5 + $0x178] sm:$0xff] }
  0x7d   :  { %2224 = vmatprep.subr.bf16.mxu0 %v2223_v18  ;;  %2252 = vmatprep.subr.bf16.mxu1 %v2251_v34  ;;  %v2295_v5 = vpack.c.bf16 %v363_v4, %v362_v3  ;;  %v2299_v8 = vpack.c.bf16 %v365_v7, %v364_v6  ;;  %v263_v10 = vld [vmem:[#allocation5 + $0xf8] sm:$0xff]  ;;  %v2922_v12 = vld [vmem:[#allocation10] sm:$0xff]  ;;  %v123_v14 = vld [vmem:[#allocation8 + $0x8] sm:$0xff] }
  0x7e   :  { %v122_v13 = vld [vmem:[#allocation8] sm:$0xff]  ;;  %v124_v17 = vld [vmem:[#allocation8 + $0x10] sm:$0xff]  ;;  %v127_v21 = vld [vmem:[#allocation8 + $0x28] sm:$0xff] }
  0x7f   :  { %v2926_v15 = vpack.c.bf16 %v123_v14, %v122_v13  ;;  %v126_v20 = vld [vmem:[#allocation8 + $0x20] sm:$0xff]  ;;  %v2939_v29 = vld [vmem:[#allocation10 + $0x8] sm:$0xff]  ;;  %v2941_v30 = vld [vmem:[#allocation10 + $0x10] sm:$0xff] }
  0x80   :  { %2226 = vmatpush3.bf16.msra.mxu0 %v2223_v18  ;;  %2254 = vmatpush3.bf16.msra.mxu1 %v2251_v34  ;;  %v125_v18 = vld [vmem:[#allocation8 + $0x18] sm:$0xff]  ;;  %v2935_v22 = vpack.c.bf16 %v127_v21, %v126_v20  ;;  %v2955_v39 = vld [vmem:[#allocation11 + $0x8] sm:$0xff]  ;;  %v128_v42 = vld [vmem:[#allocation8 + $0x30] sm:$0xff] }
  0x81   :  { %2228 = vmatprep.subr.bf16.mxu0 %v2227_v26  ;;  %2256 = vmatprep.subr.bf16.mxu1 %v2255_v40  ;;  %v2931_v19 = vpack.c.bf16 %v125_v18, %v124_v17  ;;  %v2947_v31 = vld [vmem:[#allocation10 + $0x18] sm:$0xff]  ;;  %v131_v46 = vld [vmem:[#allocation8 + $0x48] sm:$0xff]  ;;  %v132_v48 = vld [vmem:[#allocation8 + $0x50] sm:$0xff] }
  0x82   :  { %v2964_v41 = vld [vmem:[#allocation11 + $0x18] sm:$0xff]  ;;  %v134_v53 = vld [vmem:[#allocation8 + $0x60] sm:$0xff]  ;;  %v135_v54 = vld [vmem:[#allocation8 + $0x68] sm:$0xff] }
  0x83   :  { %v129_v43 = vld [vmem:[#allocation8 + $0x38] sm:$0xff]  ;;  %v845_v61 = vld [vmem:[#allocation7] sm:$0xff]  ;;  %v846_v62 = vld [vmem:[#allocation7 + $0x8] sm:$0xff] }
  0x84   :  { %2230 = vmatpush3.bf16.msra.mxu0 %v2227_v26  ;;  %2258 = vmatpush3.bf16.msra.mxu1 %v2255_v40  ;;  %v2957_v40 = vld [vmem:[#allocation11 + $0x10] sm:$0xff]  ;;  %v133_v49 = vld [vmem:[#allocation8 + $0x58] sm:$0xff]  ;;  %v2367_v0 = vpack.c.bf16 %v846_v62, %v845_v61  ;;  %v948_v1 = vld [vmem:[#allocation7 + $0x88] sm:$0xff] }
  0x85   :  { %2232 = vmatprep.subr.bf16.mxu0 %v2231_v32  ;;  %2260 = vmatprep.subr.bf16.mxu1 %v2259_v45  ;;  %v137_v58 = vld [vmem:[#allocation8 + $0x78] sm:$0xff]  ;;  %v851_v62 = vld [vmem:[#allocation7 + $0x30] sm:$0xff] }
  0x88   :  { %2234 = vmatpush3.bf16.msra.mxu0 %v2231_v32  ;;  %2262 = vmatpush3.bf16.msra.mxu1 %v2259_v45  ;;  %v2949_v32 = vld [vmem:[#allocation11] sm:$0xff] }
  0x89   :  { %2236 = vmatprep.subr.bf16.mxu0 %v2235_v38  ;;  %2264 = vmatprep.subr.bf16.mxu1 %v2263_v55  ;;  %v130_v45 = vld [vmem:[#allocation8 + $0x40] sm:$0xff] }
  0x8a   :  { %v2980_v47 = vpack.c.bf16 %v131_v46, %v130_v45  ;;  %v949_v45 = vld [vmem:[#allocation7 + $0x90] sm:$0xff]  ;;  %v950_v46 = vld [vmem:[#allocation7 + $0x98] sm:$0xff] }
  0x8c   :  { %2238 = vmatpush3.bf16.msra.mxu0 %v2235_v38  ;;  %2266 = vmatpush3.bf16.msra.mxu1 %v2263_v55  ;;  %v2992_v55 = vpack.c.bf16 %v135_v54, %v134_v53  ;;  %v850_v53 = vld [vmem:[#allocation7 + $0x28] sm:$0xff] }
  0x8d   :  { %2272 = vmatprep.subr.bf16.mxu0 %v2271_v44 }
  0x8f   :  { %1816 = vmatmul.mubr.f32.vlgmr.msra.gmra.mrb[0].mxu0 %v2906_v50 }
  0x90   :  { %2274 = vmatpush3.bf16.msra.mxu0 %v2271_v44  ;;  %1818 = vmatprep.mubr.f32.mxu0 %v2908_v52  ;;  %v2974_v44 = vpack.c.bf16 %v129_v43, %v128_v42  ;;  %v848_v42 = vld [vmem:[#allocation7 + $0x18] sm:$0xff] }
  0x91   :  { %2276 = vmatprep.subr.bf16.mxu0 %v2275_v51 }
  0x93   :  { %1819 = vmatmul.mubr.f32.gmra.mrb[2].mxu0 %v2912_v56 }
  0x94   :  { %2278 = vmatpush3.bf16.msra.mxu0 %v2275_v51  ;;  %1891 = vmatprep.mubr.f32.mxu0 %v2902_v9  ;;  %v262_v9 = vld [vmem:[#allocation5 + $0xf0] sm:$0xff]  ;;  %v2986_v51 = vpack.c.bf16 %v133_v49, %v132_v48  ;;  %v2403_v48 = vpack.c.bf16 %v950_v46, %v949_v45  ;;  %v849_v49 = vld [vmem:[#allocation7 + $0x20] sm:$0xff]  ;;  %v1050_v46 = vld [vmem:[#allocation7 + $0x108] sm:$0xff] }
  0x95   :  { %2280 = vmatprep.subr.bf16.mxu0 %v2279_v57  ;;  %v2267_v11 = vpack.c.bf16 %v263_v10, %v262_v9  ;;  %v2375_v54 = vpack.c.bf16 %v850_v53, %v849_v49  ;;  %v1049_v45 = vld [vmem:[#allocation7 + $0x100] sm:$0xff] }
  0x97   :  { %2268 = vmatprep.subr.bf16.mxu1 %v2267_v11 }
  0x98   :  { %2282 = vmatpush3.bf16.msra.mxu0 %v2279_v57  ;;  %2270 = vmatpush3.bf16.msra.mxu1 %v2267_v11  ;;  %v136_v57 = vld [vmem:[#allocation8 + $0x70] sm:$0xff] }
  0x99   :  { %2284 = vmatprep.subr.bf16.mxu0 %v2283_v60  ;;  %v2998_v59 = vpack.c.bf16 %v137_v58, %v136_v57  ;;  %v951_v57 = vld [vmem:[#allocation7 + $0xa0] sm:$0xff]  ;;  %v952_v58 = vld [vmem:[#allocation7 + $0xa8] sm:$0xff] }
  0x9a   :  { %v2407_v61 = vpack.c.bf16 %v952_v58, %v951_v57 }
  0x9b   :  { %1854 = vmatmul.mubr.f32.vlgmr.msra.gmra.mrb[0].mxu1 %v2906_v50 }
  0x9c   :  { %2286 = vmatpush3.bf16.msra.mxu0 %v2283_v60  ;;  %1856 = vmatprep.mubr.f32.mxu1 %v2908_v52  ;;  %v2734_v60 = vmov 0.0  }
  0x9d   :  { %2288 = vmatprep.subr.bf16.mxu0 %v2287_v63 }
  0x9f   :  { %1857 = vmatmul.mubr.f32.gmra.mrb[2].mxu1 %v2912_v56 }
  0xa0   :  { %2290 = vmatpush3.bf16.msra.mxu0 %v2287_v63  ;;  %1905 = vmatprep.mubr.msk.f32.mxu1 %vm451_vm0, %v2922_v12  ;;  %v947_v63 = vld [vmem:[#allocation7 + $0x80] sm:$0xff] }
  0xa1   :  { %2292 = vmatprep.subr.bf16.mxu0 %v2291_v2 }
  0xa4   :  { %2294 = vmatpush3.bf16.msra.mxu0 %v2291_v2  ;;  %v2399_v2 = vpack.c.bf16 %v948_v1, %v947_v63  ;;  %v852_v63 = vld [vmem:[#allocation7 + $0x38] sm:$0xff]  ;;  %v953_v1 = vld [vmem:[#allocation7 + $0xb0] sm:$0xff] }
  0xa5   :  { %2296 = vmatprep.subr.bf16.mxu0 %v2295_v5 }
  0xa8   :  { %2298 = vmatpush3.bf16.msra.mxu0 %v2295_v5 }
  0xa9   :  { %2300 = vmatprep.subr.bf16.mxu0 %v2299_v8 }
  0xac   :  { %2302 = vmatpush3.bf16.msra.mxu0 %v2299_v8 }
  0xad   :  { %2343 = vmatprep.subr.bf16.mxu0 %v2732_v16 }
  0xaf   :  { %1892 = vmatmul.mubr.f32.vlgmr.msra.gmra.mrb[4].mxu0 %v2906_v50 }
  0xb0   :  { %1894 = vmatprep.mubr.f32.mxu0 %v2908_v52  ;;  %2345 = vmatpush3.bf16.msra.mxu0 %v2926_v15 }
  0xb1   :  { %2346 = vmatprep.subr.bf16.mxu0 %v2732_v16 }
  0xb3   :  { %1895 = vmatmul.mubr.f32.gmra.mrb[6].mxu0 %v2912_v56 }
  0xb4   :  { %2348 = vmatpush3.bf16.msra.mxu0 %v2931_v19  ;;  %1992 = vmatprep.mubr.msk.f32.mxu0 %vm2733_vm1, %v2734_v60 }
  0xb5   :  { %2349 = vmatprep.subr.bf16.mxu0 %v2732_v16 }
  0xb8   :  { %2351 = vmatpush3.bf16.msra.mxu0 %v2935_v22 }
  0xb9   :  { %2352 = vmatprep.subr.bf16.mxu0 %v2732_v16 }
  0xbc   :  { %2354 = vmatpush3.bf16.msra.mxu0 %v2974_v44 }
  0xbd   :  { %2355 = vmatprep.subr.bf16.mxu0 %v2732_v16 }
  0xc0   :  { %2357 = vmatpush3.bf16.msra.mxu0 %v2980_v47 }
  0xc1   :  { %2358 = vmatprep.subr.bf16.mxu0 %v2732_v16 }
  0xc4   :  { %2360 = vmatpush3.bf16.msra.mxu0 %v2986_v51 }
  0xc5   :  { %2361 = vmatprep.subr.bf16.mxu0 %v2732_v16 }
  0xc8   :  { %2363 = vmatpush3.bf16.msra.mxu0 %v2992_v55 }
  0xc9   :  { %2364 = vmatprep.subr.bf16.mxu0 %v2732_v16 }
  0xcc   :  { %2366 = vmatpush3.bf16.msra.mxu0 %v2998_v59 }
  0xcd   :  { %2400 = vmatprep.subr.bf16.mxu0 %v2399_v2 }
 0x162   :  { %v1817_v23 = vpop.f32.mrb[0].mxu0 }
 0x163   :  { %v228_v24 = vpop.f32.mrb[1].mxu0 }
 0x164   :  { %v2303_v25 = vpack.c.bf16 %v1817_v23, %v228_v24 }
 0x166   :  { %2304 = vmatprep.subr.bf16.mxu1 %v2303_v25  ;;  %v1820_v26 = vpop.f32.mrb[2].mxu0 }
 0x167   :  { %2306 = vmatpush3.bf16.msra.mxu1 %v2303_v25  ;;  %v238_v27 = vpop.f32.mrb[3].mxu0 }
 0x168   :  { %v2307_v28 = vpack.c.bf16 %v1820_v26, %v238_v27 }
 0x16a   :  { %2308 = vmatprep.subr.bf16.mxu1 %v2307_v28 }
 0x16b   :  { %2310 = vmatpush3.bf16.msra.mxu1 %v2307_v28 }
 0x16e   :  { %1906 = vmatmul.mubr.msk.f32.vlgmr.msra.gmra.mrb[0].mxu1 %vm451_vm0, %v2939_v29 }
 0x16f   :  { %1908 = vmatprep.mubr.msk.f32.mxu1 %vm451_vm0, %v2941_v30 }
 0x172   :  { %1909 = vmatmul.mubr.msk.f32.gmra.mrb[2].mxu1 %vm451_vm0, %v2947_v31 }
 0x173   :  { %1919 = vmatprep.mubr.msk.f32.mxu1 %vm451_vm0, %v2949_v32 }
 0x182   :  { %v1893_v33 = vpop.f32.mrb[4].mxu0 }
 0x183   :  { %v432_v34 = vpop.f32.mrb[5].mxu0 }
 0x184   :  { %v2311_v35 = vpack.c.bf16 %v1893_v33, %v432_v34 }
 0x186   :  { %v1896_v36 = vpop.f32.mrb[6].mxu0  ;;  %2312 = vmatprep.subr.bf16.mxu1 %v2311_v35 }
 0x187   :  { %v442_v37 = vpop.f32.mrb[7].mxu0  ;;  %2314 = vmatpush3.bf16.msra.mxu1 %v2311_v35 }
 0x188   :  { %v2315_v38 = vpack.c.bf16 %v1896_v36, %v442_v37 }
 0x18a   :  { %2316 = vmatprep.subr.bf16.mxu1 %v2315_v38 }
 0x18b   :  { %2318 = vmatpush3.bf16.msra.mxu1 %v2315_v38  ;;  %v847_v38 = vld [vmem:[#allocation7 + $0x10] sm:$0xff] }
 0x18c   :  { %2319 = vmatprep.subr.bf16.mxu1 %v2732_v16  ;;  %v2371_v43 = vpack.c.bf16 %v848_v42, %v847_v38  ;;  %v962_v38 = vld [vmem:[#allocation7 + $0xf8] sm:$0xff] }
 0x18e   :  { %1920 = vmatmul.mubr.msk.f32.vlgmr.msra.gmra.mrb[0].mxu1 %vm451_vm0, %v2955_v39 }
 0x18f   :  { %1922 = vmatprep.mubr.msk.f32.mxu1 %vm451_vm0, %v2957_v40  ;;  %2321 = vmatpush3.bf16.msra.mxu1 %v2926_v15 }
 0x190   :  { %2322 = vmatprep.subr.bf16.mxu1 %v2732_v16 }
 0x192   :  { %1923 = vmatmul.mubr.msk.f32.gmra.mrb[2].mxu1 %vm451_vm0, %v2964_v41 }
 0x193   :  { %2324 = vmatpush3.bf16.msra.mxu1 %v2931_v19  ;;  %1957 = vmatprep.mubr.msk.f32.mxu1 %vm2733_vm1, %v2734_v60 }
 0x194   :  { %2325 = vmatprep.subr.bf16.mxu1 %v2732_v16 }
 0x197   :  { %2327 = vmatpush3.bf16.msra.mxu1 %v2935_v22 }
 0x198   :  { %2328 = vmatprep.subr.bf16.mxu1 %v2732_v16 }
 0x19b   :  { %2330 = vmatpush3.bf16.msra.mxu1 %v2974_v44 }
 0x19c   :  { %2331 = vmatprep.subr.bf16.mxu1 %v2732_v16 }
 0x19f   :  { %2333 = vmatpush3.bf16.msra.mxu1 %v2980_v47 }
 0x1a0   :  { %2334 = vmatprep.subr.bf16.mxu1 %v2732_v16 }
 0x1a3   :  { %2336 = vmatpush3.bf16.msra.mxu1 %v2986_v51 }
 0x1a4   :  { %2337 = vmatprep.subr.bf16.mxu1 %v2732_v16 }
 0x1a7   :  { %2339 = vmatpush3.bf16.msra.mxu1 %v2992_v55 }
 0x1a8   :  { %2340 = vmatprep.subr.bf16.mxu1 %v2732_v16 }
 0x1ab   :  { %2342 = vmatpush3.bf16.msra.mxu1 %v2998_v59 }
 0x1ac   :  { %2368 = vmatprep.subr.bf16.mxu1 %v2367_v0 }
 0x261   :  { %v3006_v3 = vpop.f32.mrb[0].mxu1 }
 0x262   :  { %v660_v4 = vmul.f32 %v3006_v3, %v3006_v3  ;;  %v3010_v5 = vpop.f32.mrb[1].mxu1 }
 0x263   :  { %v650_v6 = vadd.f32 %v3006_v3, %v3010_v5  ;;  %v659_v7 = vmul.f32 %v3010_v5, %v3010_v5 }
 0x265   :  { %v663_v8 = vadd.f32 %v660_v4, %v659_v7  ;;  %v3016_v9 = vpop.f32.mrb[2].mxu1  ;;  %v854_v7 = vld [vmem:[#allocation7 + $0x48] sm:$0xff] }
 0x266   :  { %v3018_v10 = vpop.f32.mrb[3].mxu1  ;;  %v662_v14 = vmul.f32 %v3016_v9, %v3016_v9 }
 0x267   :  { %v651_v11 = vadd.f32 %v650_v6, %v3018_v10  ;;  %v661_v13 = vmul.f32 %v3018_v10, %v3018_v10  ;;  %v853_v6 = vld [vmem:[#allocation7 + $0x40] sm:$0xff] }
 0x269   :  { %v652_v17 = vadd.f32 %v3016_v9, %v651_v11  ;;  %v664_v18 = vadd.f32 %v663_v8, %v661_v13  ;;  %v2383_v8 = vpack.c.bf16 %v854_v7, %v853_v6  ;;  %v955_v11 = vld [vmem:[#allocation7 + $0xc0] sm:$0xff]  ;;  %v956_v13 = vld [vmem:[#allocation7 + $0xc8] sm:$0xff] }
 0x26a   :  { %v818_v7 = vld [vmem:[%s3125_s7] sm:$0x1] }
 0x26b   :  { %v653_v20 = vrot.slane %v652_v17, 4  ;;  %v665_v21 = vadd.f32 %v664_v18, %v662_v14  ;;  %v2415_v14 = vpack.c.bf16 %v956_v13, %v955_v11  ;;  %v856_v18 = vld [vmem:[#allocation7 + $0x58] sm:$0xff] }
 0x26d   :  { %v654_v23 = vadd.f32 %v653_v20, %v652_v17  ;;  %v666_v24 = vrot.slane %v665_v21, 4  ;;  %v855_v17 = vld [vmem:[#allocation7 + $0x50] sm:$0xff] }
 0x26e   :  { %v2387_v20 = vpack.c.bf16 %v856_v18, %v855_v17 }
 0x26f   :  { %v655_v25 = vrot.slane %v654_v23, 2  ;;  %v667_v26 = vadd.f32 %v666_v24, %v665_v21  ;;  %v957_v21 = vld [vmem:[#allocation7 + $0xd0] sm:$0xff] }
 0x271   :  { %v656_v27 = vadd.f32 %v655_v25, %v654_v23  ;;  %v668_v28 = vrot.slane %v667_v26, 2  ;;  %v958_v23 = vld [vmem:[#allocation7 + $0xd8] sm:$0xff]  ;;  %v857_v25 = vld [vmem:[#allocation7 + $0x60] sm:$0xff] }
 0x272   :  { %v2419_v24 = vpack.c.bf16 %v958_v23, %v957_v21 }
 0x273   :  { %v657_v33 = vrot.slane %v656_v27, 1  ;;  %v669_v34 = vadd.f32 %v668_v28, %v667_v26  ;;  %v858_v26 = vld [vmem:[#allocation7 + $0x68] sm:$0xff]  ;;  %v959_v28 = vld [vmem:[#allocation7 + $0xe0] sm:$0xff] }
 0x275   :  { %v658_v35 = vadd.f32 %v657_v33, %v656_v27  ;;  %v670_v36 = vrot.slane %v669_v34, 1  ;;  %v2391_v27 = vpack.c.bf16 %v858_v26, %v857_v25  ;;  %v960_v33 = vld [vmem:[#allocation7 + $0xe8] sm:$0xff]  ;;  %v1051_v26 = vld [vmem:[#allocation7 + $0x110] sm:$0xff] }
 0x277   :  { %1958 = vmatmul.mubr.f32.vlgmr.msra.gmra.mrb[4].mxu1 %v658_v35  ;;  %v671_v37 = vadd.f32 %v670_v36, %v669_v34  ;;  %v859_v34 = vld [vmem:[#allocation7 + $0x70] sm:$0xff]  ;;  %v2423_v35 = vpack.c.bf16 %v960_v33, %v959_v28  ;;  %v860_v36 = vld [vmem:[#allocation7 + $0x78] sm:$0xff] }
 0x278   :  { %2370 = vmatpush3.bf16.msra.mxu1 %v2367_v0  ;;  %v2379_v0 = vpack.c.bf16 %v852_v63, %v851_v62  ;;  %v2395_v42 = vpack.c.bf16 %v860_v36, %v859_v34  ;;  %v822_v63 = vlaneseq  ;;  %v1053_v36 = vld [vmem:[#allocation7 + $0x120] sm:$0xff] }
 0x279   :  { %1993 = vmatmul.mubr.f32.vlgmr.msra.gmra.mrb[8].mxu0 %v671_v37  ;;  %2372 = vmatprep.subr.bf16.mxu1 %v2371_v43  ;;  %v961_v37 = vld [vmem:[#allocation7 + $0xf0] sm:$0xff] }
 0x27a   :  { %2402 = vmatpush3.bf16.msra.mxu0 %v2399_v2  ;;  %v954_v2 = vld [vmem:[#allocation7 + $0xb8] sm:$0xff] }
 0x27b   :  { %2404 = vmatprep.subr.bf16.mxu0 %v2403_v48  ;;  %v2411_v4 = vpack.c.bf16 %v954_v2, %v953_v1  ;;  %v814_v1 = vld [vmem:[%s3124_s6] sm:$0x1] }
 0x27c   :  { %2374 = vmatpush3.bf16.msra.mxu1 %v2371_v43  ;;  %v2427_v43 = vpack.c.bf16 %v962_v38, %v961_v37  ;;  %v1055_v37 = vld [vmem:[#allocation7 + $0x130] sm:$0xff]  ;;  %v1056_v38 = vld [vmem:[#allocation7 + $0x138] sm:$0xff] }
 0x27d   :  { %2376 = vmatprep.subr.bf16.mxu1 %v2375_v54 }
 0x27e   :  { %2406 = vmatpush3.bf16.msra.mxu0 %v2403_v48  ;;  %v2431_v48 = vpack.c.bf16 %v1050_v46, %v1049_v45  ;;  %v1058_v45 = vld [vmem:[#allocation7 + $0x148] sm:$0xff] }
 0x27f   :  { %2408 = vmatprep.subr.bf16.mxu0 %v2407_v61 }
 0x280   :  { %2378 = vmatpush3.bf16.msra.mxu1 %v2375_v54 }
 0x281   :  { %2380 = vmatprep.subr.bf16.mxu1 %v2379_v0 }
 0x282   :  { %2410 = vmatpush3.bf16.msra.mxu0 %v2407_v61 }
 0x283   :  { %2412 = vmatprep.subr.bf16.mxu0 %v2411_v4 }
 0x284   :  { %2382 = vmatpush3.bf16.msra.mxu1 %v2379_v0  ;;  %v823_v0 = vshrl.u32 %v822_v63, 7 }
 0x285   :  { %2384 = vmatprep.subr.bf16.mxu1 %v2383_v8 }
 0x286   :  { %2414 = vmatpush3.bf16.msra.mxu0 %v2411_v4  ;;  %v3029_v2 = vsub.s32 0, %v823_v0 }
 0x287   :  { %2416 = vmatprep.subr.bf16.mxu0 %v2415_v14 }
 0x288   :  { %2386 = vmatpush3.bf16.msra.mxu1 %v2383_v8 }
 0x289   :  { %2388 = vmatprep.subr.bf16.mxu1 %v2387_v20 }
 0x28a   :  { %2418 = vmatpush3.bf16.msra.mxu0 %v2415_v14 }
 0x28b   :  { %2420 = vmatprep.subr.bf16.mxu0 %v2419_v24 }
 0x28c   :  { %2390 = vmatpush3.bf16.msra.mxu1 %v2387_v20 }
 0x28d   :  { %2392 = vmatprep.subr.bf16.mxu1 %v2391_v27 }
 0x28e   :  { %2422 = vmatpush3.bf16.msra.mxu0 %v2419_v24 }
 0x28f   :  { %2424 = vmatprep.subr.bf16.mxu0 %v2423_v35 }
 0x290   :  { %2394 = vmatpush3.bf16.msra.mxu1 %v2391_v27  ;;  %v1052_v27 = vld [vmem:[#allocation7 + $0x118] sm:$0xff] }
 0x291   :  { %2396 = vmatprep.subr.bf16.mxu1 %v2395_v42 }
 0x292   :  { %2426 = vmatpush3.bf16.msra.mxu0 %v2423_v35  ;;  %v2435_v35 = vpack.c.bf16 %v1052_v27, %v1051_v26 }
 0x293   :  { %2428 = vmatprep.subr.bf16.mxu0 %v2427_v43 }
 0x294   :  { %2398 = vmatpush3.bf16.msra.mxu1 %v2395_v42  ;;  %v2443_v42 = vpack.c.bf16 %v1056_v38, %v1055_v37  ;;  %v1488_v37 = vld [vmem:[%s3126_s8] sm:$0x1]  ;;  %s2735_s8 = smov [#allocation13]  }
 0x295   :  { %2432 = vmatprep.subr.bf16.mxu1 %v2431_v48  ;;  %s1532_s11 = sshll.u32 %s2735_s8, 4  ;;  %s1533_s11 = int_to_ptr.vmem [resolvable:$true] %s1532_s11 }
 0x296   :  { %2430 = vmatpush3.bf16.msra.mxu0 %v2427_v43  ;;  %v1057_v43 = vld [vmem:[#allocation7 + $0x140] sm:$0xff]  ;;  %p2697_p7 = scmp.lt.s32.totalorder %s1533_s11, %s1533_s11 }
 0x297   :  { %v2447_v46 = vpack.c.bf16 %v1058_v45, %v1057_v43  ;;  %v1492_v43 = vld [vmem:[%s3127_s9] sm:$0x1]  ;;  %s2692_s9 = scalar_lea.vmem %s1533_s11, 512 }
 0x298   :  { %p2693_p6 = scmp.ne.s32.totalorder %s1533_s11, %s2692_s9  ;;  %p2698_p8 = scmp.lt.s32.totalorder %s2692_s9, %s2692_s9 }
 0x29a   :  { %p2699_p9 = por %p2698_p8, %p2697_p7 }
 0x29c   :  { %p2700_p10 = pnand %p2699_p9, %p2693_p6 }
 0x34a   :  { %v738_v49 = vpop.f32.mrb[4].mxu1 }
 0x34b   :  { %v812_v53 = vmul.f32 %v738_v49, %v738_v49  ;;  %v1959_v54 = vpop.f32.mrb[5].mxu1 }
 0x34c   :  { %v808_v57 = vpop.f32.mrb[8].mxu0  ;;  %v1061_v54 = vld [vmem:[#allocation7 + $0x160] sm:$0xff] }
 0x34d   :  { %v813_v58 = vsub.f32 %v808_v57, %v812_v53  ;;  %v1994_v61 = vpop.f32.mrb[9].mxu0  ;;  %v1062_v57 = vld [vmem:[#allocation7 + $0x168] sm:$0xff] }
 0x34e   :  { %v1063_v61 = vld [vmem:[#allocation7 + $0x170] sm:$0xff] }
 0x34f   :  { %v815_v62 = vadd.f32 1e-05, %v813_v58  ;;  %v2455_v58 = vpack.c.bf16 %v1062_v57, %v1061_v54 }
 0x351   :  { %2555 = vrsqrt.f32 %v815_v62  ;;  %v1064_v62 = vld [vmem:[#allocation7 + $0x178] sm:$0xff] }
 0x35b   :  { %v2556_v4 = vpop.eup %2555 }
 0x35c   :  { %v817_v6 = vmul.f32 %v2556_v4, %v814_v1 }
 0x35e   :  { %v819_v8 = vmul.f32 %v817_v6, %v738_v49  ;;  %v825_v11 = vrot.slane %v817_v6, %v3029_v2  ;;  %v1060_v49 = vld [vmem:[#allocation7 + $0x158] sm:$0xff] }
 0x360   :  { %v820_v13 = vsub.f32 %v818_v7, %v819_v8  ;;  %v827_v14 = vmul.f32 %v825_v11, %v3010_v5  ;;  %v828_v17 = vmul.f32 %v3006_v3, %v825_v11  ;;  %v829_v18 = vmul.f32 %v825_v11, %v3018_v10  ;;  %v1054_v3 = vld [vmem:[#allocation7 + $0x128] sm:$0xff] }
 0x361   :  { %v830_v20 = vmul.f32 %v3016_v9, %v825_v11  ;;  %v2439_v10 = vpack.c.bf16 %v1054_v3, %v1053_v36 }
 0x362   :  { %v835_v21 = vrot.slane %v820_v13, %v3029_v2 }
 0x364   :  { %v837_v23 = vadd.f32 %v835_v21, %v827_v14  ;;  %v838_v24 = vadd.f32 %v835_v21, %v828_v17  ;;  %v839_v25 = vadd.f32 %v835_v21, %v829_v18  ;;  %v840_v28 = vadd.f32 %v835_v21, %v830_v20 }
 0x366   :  { %v841_v33 = vmax.f32 %v837_v23, 0.0  ;;  %v842_v34 = vmax.f32 %v838_v24, 0.0  ;;  %v843_v5 = vmax.f32 %v839_v25, 0.0  ;;  %v844_v9 = vmax.f32 %v840_v28, 0.0 }
 0x368   :  { %2027 = vmatprep.mubr.f32.mxu1 %v841_v33  ;;  %2065 = vmatprep.mubr.f32.mxu0 %v841_v33 }
 0x369   :  { %2028 = vmatmul.mubr.f32.vlgmr.msra.gmra.mrb[6].mxu1 %v842_v34  ;;  %2066 = vmatmul.mubr.f32.vlgmr.msra.gmra.mrb[10].mxu0 %v842_v34 }
 0x36a   :  { %2434 = vmatpush3.bf16.msra.mxu1 %v2431_v48  ;;  %2030 = vmatprep.mubr.f32.mxu1 %v843_v5  ;;  %v1059_v48 = vld [vmem:[#allocation7 + $0x150] sm:$0xff] }
 0x36b   :  { %2068 = vmatprep.mubr.f32.mxu0 %v843_v5  ;;  %2436 = vmatprep.subr.bf16.mxu1 %v2435_v35  ;;  %v2451_v53 = vpack.c.bf16 %v1060_v49, %v1059_v48 }
 0x36d   :  { %2031 = vmatmul.mubr.f32.gmra.mrb[8].mxu1 %v844_v9  ;;  %2069 = vmatmul.mubr.f32.gmra.mrb[12].mxu0 %v844_v9 }
 0x36e   :  { %2438 = vmatpush3.bf16.msra.mxu1 %v2435_v35  ;;  %2103 = vmatprep.mubr.f32.mxu1 %v841_v33 }
 0x36f   :  { %2440 = vmatprep.subr.bf16.mxu1 %v2439_v10  ;;  %2117 = vmatprep.mubr.msk.f32.mxu0 %vm451_vm0, %v2922_v12  ;;  %v2459_v12 = vpack.c.bf16 %v1064_v62, %v1063_v61 }
 0x372   :  { %2442 = vmatpush3.bf16.msra.mxu1 %v2439_v10 }
 0x373   :  { %2444 = vmatprep.subr.bf16.mxu1 %v2443_v42 }
 0x376   :  { %2446 = vmatpush3.bf16.msra.mxu1 %v2443_v42 }
 0x377   :  { %2448 = vmatprep.subr.bf16.mxu1 %v2447_v46 }
 0x37a   :  { %2450 = vmatpush3.bf16.msra.mxu1 %v2447_v46 }
 0x37b   :  { %2452 = vmatprep.subr.bf16.mxu1 %v2451_v53 }
 0x37e   :  { %2454 = vmatpush3.bf16.msra.mxu1 %v2451_v53 }
 0x37f   :  { %2456 = vmatprep.subr.bf16.mxu1 %v2455_v58 }
 0x382   :  { %2458 = vmatpush3.bf16.msra.mxu1 %v2455_v58 }
 0x383   :  { %2460 = vmatprep.subr.bf16.mxu1 %v2459_v12 }
 0x386   :  { %2462 = vmatpush3.bf16.msra.mxu1 %v2459_v12 }
 0x387   :  { %2503 = vmatprep.subr.bf16.mxu1 %v2732_v16 }
 0x389   :  { %2104 = vmatmul.mubr.f32.vlgmr.msra.gmra.mrb[10].mxu1 %v842_v34 }
 0x38a   :  { %2106 = vmatprep.mubr.f32.mxu1 %v843_v5  ;;  %2505 = vmatpush3.bf16.msra.mxu1 %v2926_v15 }
 0x38b   :  { %2506 = vmatprep.subr.bf16.mxu1 %v2732_v16 }
 0x38d   :  { %2107 = vmatmul.mubr.f32.gmra.mrb[12].mxu1 %v844_v9 }
 0x38e   :  { %2508 = vmatpush3.bf16.msra.mxu1 %v2931_v19  ;;  %2204 = vmatprep.mubr.msk.f32.mxu1 %vm2733_vm1, %v2734_v60 }
 0x38f   :  { %2509 = vmatprep.subr.bf16.mxu1 %v2732_v16 }
 0x392   :  { %2511 = vmatpush3.bf16.msra.mxu1 %v2935_v22 }
 0x393   :  { %2512 = vmatprep.subr.bf16.mxu1 %v2732_v16 }
 0x396   :  { %2514 = vmatpush3.bf16.msra.mxu1 %v2974_v44 }
 0x397   :  { %2515 = vmatprep.subr.bf16.mxu1 %v2732_v16 }
 0x39a   :  { %2517 = vmatpush3.bf16.msra.mxu1 %v2980_v47 }
 0x39b   :  { %2518 = vmatprep.subr.bf16.mxu1 %v2732_v16 }
 0x39e   :  { %2520 = vmatpush3.bf16.msra.mxu1 %v2986_v51 }
 0x39f   :  { %2521 = vmatprep.subr.bf16.mxu1 %v2732_v16 }
 0x3a2   :  { %2523 = vmatpush3.bf16.msra.mxu1 %v2992_v55 }
 0x3a3   :  { %2524 = vmatprep.subr.bf16.mxu1 %v2732_v16 }
 0x3a6   :  { %2526 = vmatpush3.bf16.msra.mxu1 %v2998_v59 }
 0x43c   :  { %v2029_v63 = vpop.f32.mrb[6].mxu1 }
 0x43d   :  { %v927_v0 = vpop.f32.mrb[7].mxu1 }
 0x43e   :  { %v2463_v1 = vpack.c.bf16 %v2029_v63, %v927_v0  ;;  %v2559_v0 = vld [vmem:[#allocation2] sm:$0xff] }
 0x440   :  { %v2032_v4 = vpop.f32.mrb[8].mxu1  ;;  %2464 = vmatprep.subr.bf16.mxu0 %v2463_v1 }
 0x441   :  { %v937_v6 = vpop.f32.mrb[9].mxu1  ;;  %2466 = vmatpush3.bf16.msra.mxu0 %v2463_v1 }
 0x442   :  { %v2467_v7 = vpack.c.bf16 %v2032_v4, %v937_v6 }
 0x444   :  { %2468 = vmatprep.subr.bf16.mxu0 %v2467_v7 }
 0x445   :  { %2470 = vmatpush3.bf16.msra.mxu0 %v2467_v7 }
 0x448   :  { %2118 = vmatmul.mubr.msk.f32.vlgmr.msra.gmra.mrb[10].mxu0 %vm451_vm0, %v2939_v29 }
 0x449   :  { %2120 = vmatprep.mubr.msk.f32.mxu0 %vm451_vm0, %v2941_v30 }
 0x44c   :  { %2121 = vmatmul.mubr.msk.f32.gmra.mrb[12].mxu0 %vm451_vm0, %v2947_v31 }
 0x44d   :  { %2131 = vmatprep.mubr.msk.f32.mxu0 %vm451_vm0, %v2949_v32 }
 0x45c   :  { %v2105_v8 = vpop.f32.mrb[10].mxu1 }
 0x45d   :  { %v1131_v11 = vpop.f32.mrb[11].mxu1 }
 0x45e   :  { %v2471_v13 = vpack.c.bf16 %v2105_v8, %v1131_v11 }
 0x460   :  { %v2108_v14 = vpop.f32.mrb[12].mxu1  ;;  %2472 = vmatprep.subr.bf16.mxu0 %v2471_v13 }
 0x461   :  { %v1141_v17 = vpop.f32.mrb[13].mxu1  ;;  %2474 = vmatpush3.bf16.msra.mxu0 %v2471_v13 }
 0x462   :  { %v2475_v18 = vpack.c.bf16 %v2108_v14, %v1141_v17 }
 0x464   :  { %2476 = vmatprep.subr.bf16.mxu0 %v2475_v18 }
 0x465   :  { %2478 = vmatpush3.bf16.msra.mxu0 %v2475_v18 }
 0x466   :  { %2479 = vmatprep.subr.bf16.mxu0 %v2732_v16 }
 0x468   :  { %2132 = vmatmul.mubr.msk.f32.vlgmr.msra.gmra.mrb[10].mxu0 %vm451_vm0, %v2955_v39 }
 0x469   :  { %2134 = vmatprep.mubr.msk.f32.mxu0 %vm451_vm0, %v2957_v40  ;;  %2481 = vmatpush3.bf16.msra.mxu0 %v2926_v15 }
 0x46a   :  { %2482 = vmatprep.subr.bf16.mxu0 %v2732_v16 }
 0x46c   :  { %2135 = vmatmul.mubr.msk.f32.gmra.mrb[12].mxu0 %vm451_vm0, %v2964_v41 }
 0x46d   :  { %2484 = vmatpush3.bf16.msra.mxu0 %v2931_v19  ;;  %2169 = vmatprep.mubr.msk.f32.mxu0 %vm2733_vm1, %v2734_v60 }
 0x46e   :  { %2485 = vmatprep.subr.bf16.mxu0 %v2732_v16 }
 0x471   :  { %2487 = vmatpush3.bf16.msra.mxu0 %v2935_v22 }
 0x472   :  { %2488 = vmatprep.subr.bf16.mxu0 %v2732_v16 }
 0x475   :  { %2490 = vmatpush3.bf16.msra.mxu0 %v2974_v44 }
 0x476   :  { %2491 = vmatprep.subr.bf16.mxu0 %v2732_v16 }
 0x479   :  { %2493 = vmatpush3.bf16.msra.mxu0 %v2980_v47 }
 0x47a   :  { %2494 = vmatprep.subr.bf16.mxu0 %v2732_v16 }
 0x47d   :  { %2496 = vmatpush3.bf16.msra.mxu0 %v2986_v51 }
 0x47e   :  { %2497 = vmatprep.subr.bf16.mxu0 %v2732_v16 }
 0x481   :  { %2499 = vmatpush3.bf16.msra.mxu0 %v2992_v55 }
 0x482   :  { %2500 = vmatprep.subr.bf16.mxu0 %v2732_v16 }
 0x485   :  { %2502 = vmatpush3.bf16.msra.mxu0 %v2998_v59 }
 0x53b   :  { %v2133_v15 = vpop.f32.mrb[10].mxu0 }
 0x53c   :  { %v1334_v19 = vmul.f32 %v2133_v15, %v2133_v15  ;;  %v1301_v22 = vpop.f32.mrb[11].mxu0 }
 0x53d   :  { %v1324_v29 = vadd.f32 %v2133_v15, %v1301_v22  ;;  %v1333_v30 = vmul.f32 %v1301_v22, %v1301_v22 }
 0x53f   :  { %v1337_v31 = vadd.f32 %v1334_v19, %v1333_v30  ;;  %v2136_v32 = vpop.f32.mrb[12].mxu0 }
 0x540   :  { %v1311_v39 = vpop.f32.mrb[13].mxu0  ;;  %v1336_v44 = vmul.f32 %v2136_v32, %v2136_v32 }
 0x541   :  { %v1325_v40 = vadd.f32 %v1324_v29, %v1311_v39  ;;  %v1335_v41 = vmul.f32 %v1311_v39, %v1311_v39 }
 0x543   :  { %v1326_v47 = vadd.f32 %v2136_v32, %v1325_v40  ;;  %v1338_v51 = vadd.f32 %v1337_v31, %v1335_v41 }
 0x545   :  { %v1327_v60 = vrot.slane %v1326_v47, 4  ;;  %v1339_v20 = vadd.f32 %v1338_v51, %v1336_v44 }
 0x547   :  { %v1328_v55 = vadd.f32 %v1327_v60, %v1326_v47  ;;  %v1340_v21 = vrot.slane %v1339_v20, 4 }
 0x549   :  { %v1329_v16 = vrot.slane %v1328_v55, 2  ;;  %v1341_v23 = vadd.f32 %v1340_v21, %v1339_v20 }
 0x54b   :  { %v1330_v59 = vadd.f32 %v1329_v16, %v1328_v55  ;;  %v1342_v24 = vrot.slane %v1341_v23, 2 }
 0x54d   :  { %v1331_v25 = vrot.slane %v1330_v59, 1  ;;  %v1343_v26 = vadd.f32 %v1342_v24, %v1341_v23 }
 0x54f   :  { %v1332_v27 = vadd.f32 %v1331_v25, %v1330_v59  ;;  %v1344_v28 = vrot.slane %v1343_v26, 1 }
 0x551   :  { %2170 = vmatmul.mubr.f32.vlgmr.msra.gmra.mrb[14].mxu0 %v1332_v27  ;;  %v1345_v33 = vadd.f32 %v1344_v28, %v1343_v26 }
 0x553   :  { %2205 = vmatmul.mubr.f32.vlgmr.msra.gmra.mrb[14].mxu1 %v1345_v33 }
 0x624   :  { %v1412_v34 = vpop.f32.mrb[14].mxu0 }
 0x625   :  { %v1486_v35 = vmul.f32 %v1412_v34, %v1412_v34  ;;  %v2171_v5 = vpop.f32.mrb[15].mxu0 }
 0x626   :  { %v1482_v36 = vpop.f32.mrb[14].mxu1 }
 0x627   :  { %v1487_v3 = vsub.f32 %v1482_v36, %v1486_v35  ;;  %v2206_v9 = vpop.f32.mrb[15].mxu1 }
 0x629   :  { %v1489_v10 = vadd.f32 1e-05, %v1487_v3 }
 0x62b   :  { %2557 = vrsqrt.f32 %v1489_v10 }
 0x635   :  { %v2558_v38 = vpop.eup %2557 }
 0x636   :  { %v1491_v42 = vmul.f32 %v2558_v38, %v1488_v37 }
 0x638   :  { %v1493_v45 = vmul.f32 %v1491_v42, %v1412_v34  ;;  %v1499_v46 = vrot.slane %v1491_v42, %v3029_v2 }
 0x63a   :  { %v1494_v48 = vsub.f32 %v1492_v43, %v1493_v45  ;;  %v1501_v49 = vmul.f32 %v1499_v46, %v1301_v22  ;;  %v1502_v53 = vmul.f32 %v2133_v15, %v1499_v46  ;;  %v1503_v54 = vmul.f32 %v1499_v46, %v1311_v39 }
 0x63b   :  { %v1504_v57 = vmul.f32 %v2136_v32, %v1499_v46 }
 0x63c   :  { %v1509_v58 = vrot.slane %v1494_v48, %v3029_v2 }
 0x63e   :  { %v1511_v61 = vadd.f32 %v1509_v58, %v1501_v49  ;;  %v1512_v62 = vadd.f32 %v1509_v58, %v1502_v53  ;;  %v1513_v12 = vadd.f32 %v1509_v58, %v1503_v54  ;;  %v1514_v63 = vadd.f32 %v1509_v58, %v1504_v57 }
 0x640   :  { %v1515_v1 = vadd.f32 %v2559_v0, %v1511_v61  ;;  %v1516_v4 = vadd.f32 %v1512_v62, %v2906_v50  ;;  %v1517_v6 = vadd.f32 %v1513_v12, %v2908_v52  ;;  %v1518_v7 = vadd.f32 %v1514_v63, %v2912_v56 }
 0x642   :  { %v1519_v8 = vmax.f32 %v1515_v1, 0.0  ;;  %v1520_v11 = vmax.f32 %v1516_v4, 0.0  ;;  %v1521_v13 = vmax.f32 %v1517_v6, 0.0  ;;  %v1522_v14 = vmax.f32 %v1518_v7, 0.0 }
 0x644   :  { %1523 = vst [vmem:[#allocation13] sm:$0xff] %v1519_v8  ;;  %1524 = vst [vmem:[#allocation13 + $0x8] sm:$0xff] %v1520_v11 }
 0x645   :  { %1525 = vst [vmem:[#allocation13 + $0x10] sm:$0xff] %v1521_v13  ;;  %1526 = vst [vmem:[#allocation13 + $0x18] sm:$0xff] %v1522_v14 }
 0x646   :  { %2703 = shalt.err (!%p2700_p10)
}
 0x647   :  { %s2704_s12 = scalar_lea.hbm %s3128_s10, 512 }
 0x648   :  { %p2705_p11 = scmp.ne.s32.totalorder %s3128_s10, %s2704_s12  ;;  %p2708_p12 = scmp.lt.u32.totalorder %s2704_s12, %s3128_s10 }
 0x64a   :  { %p2710_p13 = pnand %p2708_p12, %p2705_p11 }
 0x64c   :  { %2713 = shalt.err (!%p2710_p13)
}
 0x64d   :  { %1538 = dma.vmem_to_hbm [thread:$0]  %s1533_s11, 512, %s3128_s10, [#allocation4], %s2726_s25, %s2726_s25, %s2727_s26  }
 0x64e   :  { %2722 = dma.done.wait [#allocation4], 512  }
 0x64f   :  { %2723 = vsyncadd [#allocation4], 4294966784 }
 0x650   :  { %1542 = vsyncpa [#allocation3], 1 }
 0x651   :  { %1543 = vsyncpa [#allocation6], 1 }
 0x652   :  { %1544 = vsyncpa [#allocation9], 1 }
 0x653   :  { %1545 = vsyncpa [#allocation12], 1 }
 0x654   :  { %1546 = vsyncpa [#allocation4], 1 }

</bundles_post_ra>
